<compile_context>
chip_gen: v6e
topology: v6e:2x2x1
jax: 0.10.0
libtpu: 0.0.40
codegen_flags: <defaults>
</compile_context>

<pallas_src>
import functools

import jax
import jax.numpy as jnp
from jax.experimental import pallas as pl
from jax.experimental.pallas import tpu as pltpu


def _round_up(x, m):
    return ((x + m - 1) // m) * m


def _cdiv(a, b):
    return -(-a // b)


def _chip_vmem_bytes():
    try:
        info = pltpu.get_tpu_info()
        cap = getattr(info, "vmem_capacity_bytes", None)
        if cap:
            return int(cap)
    except Exception:
        pass
    return 64 << 20  # conservative: v7x per-TC value; below v5e/v6e physical VMEM


def _jsd_kernel(p_ref, q_ref, acc_ref, *, n_rows, tile_rows, tiles_per_split):
    c = pl.program_id(0)
    t = pl.program_id(1)

    @pl.when(t == 0)
    def _():
        acc_ref[...] = jnp.zeros_like(acc_ref)

    p = p_ref[...].astype(jnp.float32)
    q = q_ref[...].astype(jnp.float32)

    # log_softmax along lanes; one exp per element, shifted logits bound once.
    p_shift = p - jnp.max(p, axis=-1, keepdims=True)
    e_p = jnp.exp(p_shift)
    s_p = jnp.sum(e_p, axis=-1, keepdims=True)
    p_ls = p_shift - jnp.log(s_p)
    p_prob = e_p * (1.0 / s_p)          # per-row reciprocal, broadcast multiply

    q_shift = q - jnp.max(q, axis=-1, keepdims=True)
    e_q = jnp.exp(q_shift)
    s_q = jnp.sum(e_q, axis=-1, keepdims=True)
    q_ls = q_shift - jnp.log(s_q)
    q_prob = e_q * (1.0 / s_q)

    # With m = 0.5*(p_ls + q_ls):
    #   exp(p_ls)*(p_ls-m) + exp(q_ls)*(q_ls-m) = 0.5*(P-Q)*(p_ls-q_ls)
    # Accumulate the un-scaled product, reduced over the class (lane) axis.
    prod = (p_prob - q_prob) * (p_ls - q_ls)
    row_sum = jnp.sum(prod, axis=-1, keepdims=True)          # (tile_rows, 1)

    # Mask the ragged tail (undefined data in boundary-block padding) and fully
    # out-of-range duplicate steps from the clamped index_map, using LOGICAL rows.
    row0 = (c * tiles_per_split + t) * tile_rows
    rows = row0 + jax.lax.broadcasted_iota(jnp.int32, (tile_rows, 1), 0)
    acc_ref[...] += jnp.where(rows < n_rows, row_sum, 0.0)


def jsd(p, q, *, num_splits=1, target_tile_bytes=4 << 20, vmem_budget_bytes=48 << 20):
    assert p.shape == q.shape, "p and q must have the same shape"
    d = p.shape[-1]
    p2 = p.reshape(-1, d)
    q2 = q.reshape(-1, d)
    n = p2.shape[0]
    num_splits = max(int(num_splits), 1)

    itemsize = jnp.dtype(p2.dtype).itemsize
    mult = max(8, 32 // itemsize)          # sublane multiple for the input dtype

    chip_vmem = _chip_vmem_bytes()
    budget = max(min(vmem_budget_bytes, chip_vmem - (12 << 20)), 8 << 20)

    # Bytes per tile row: 2 inputs x 2 pipeline buffers + ~6 tile-sized f32
    # elementwise temporaries (upcasts, e_*, *_ls, prod) as explicit headroom.
    per_row_bytes = d * (4 * itemsize + 6 * 4)
    tile_rows = budget // per_row_bytes
    tile_rows = min(tile_rows, max(target_tile_bytes // (d * itemsize), mult), 4096)
    tile_rows = min(tile_rows, _round_up(n, mult))
    tile_rows = max(mult, (tile_rows // mult) * mult)
    # TODO(synk): for vocab-scale d where even the minimal-row tile overflows the
    # scoped VMEM limit, add a lane-chunked two-pass softmax instead.

    total_tiles = _cdiv(n, tile_rows)
    tiles_per_split = _cdiv(total_tiles, num_splits)
    grid = (num_splits, tiles_per_split)

    def in_map(c, t):
        # Clamp so a split never requests a block past the array; such duplicate
        # steps are zeroed in-kernel via the logical row mask.
        return (jnp.minimum(c * tiles_per_split + t, total_tiles - 1), 0)

    in_spec = pl.BlockSpec((tile_rows, d), in_map)
    out_spec = pl.BlockSpec((tile_rows, 1), lambda c, t: (c, 0))   # resident over t

    demand = tile_rows * per_row_bytes + (2 << 20)
    vmem_limit = int(min(max(demand, 32 << 20), chip_vmem - (8 << 20)))

    cost = pl.CostEstimate(
        flops=14 * n * d,
        transcendentals=2 * n * d,
        bytes_accessed=2 * n * d * itemsize + num_splits * tile_rows * 4,
    )

    kernel = functools.partial(
        _jsd_kernel, n_rows=n, tile_rows=tile_rows, tiles_per_split=tiles_per_split)

    acc = pl.pallas_call(
        kernel,
        out_shape=jax.ShapeDtypeStruct((num_splits * tile_rows, 1), jnp.float32),
        grid_spec=pltpu.PrefetchScalarGridSpec(
            num_scalar_prefetch=0,
            grid=grid,
            in_specs=[in_spec, in_spec],
            out_specs=out_spec,
        ),
        compiler_params=pltpu.CompilerParams(
            dimension_semantics=("parallel", "arbitrary"),
            vmem_limit_bytes=vmem_limit,
        ),
        cost_estimate=cost,
    )(p2, q2)

    # Each accumulator row holds sum_d (P-Q)*(p_ls-q_ls) = 2*(kl_p + kl_q) per row.
    # Module output = 0.5*(kl_p + kl_q) with batchmean  =>  0.25 * sum(acc) / n.
    return 0.25 * jnp.sum(acc) / jnp.float32(n)


def _jsd_reference(p, q):
    d = p.shape[-1]
    p2 = jax.nn.log_softmax(p.reshape(-1, d).astype(jnp.float32), axis=-1)
    q2 = jax.nn.log_softmax(q.reshape(-1, d).astype(jnp.float32), axis=-1)
    n = p2.shape[0]
    m = 0.5 * (p2 + q2)
    kl_p = jnp.sum(jnp.exp(p2) * (p2 - m)) / n
    kl_q = jnp.sum(jnp.exp(q2) * (q2 - m)) / n
    return 0.5 * (kl_p + kl_q)


if __name__ == "__main__":
    key = jax.random.PRNGKey(0)

    # 1) Aligned small case (row count multiple of the sublane tile).
    kp, kq, key = (*jax.random.split(key, 2), key)
    p1 = jax.random.normal(kp, (2, 4, 8, 128), dtype=jnp.float32)
    q1 = jax.random.normal(kq, (2, 4, 8, 128), dtype=jnp.float32)
    out1 = jsd(p1, q1)
    jax.block_until_ready(out1)
    ref1 = _jsd_reference(p1, q1)
    assert jnp.allclose(out1, ref1, rtol=1e-5, atol=5e-6), (out1, ref1)

    # 2) Ragged row count (30 rows) -> in-kernel tail masking, no jnp.pad.
    kp, kq = jax.random.split(jax.random.PRNGKey(1))
    p2_in = jax.random.normal(kp, (2, 3, 5, 128), dtype=jnp.float32)
    q2_in = jax.random.normal(kq, (2, 3, 5, 128), dtype=jnp.float32)
    out2 = jsd(p2_in, q2_in)
    jax.block_until_ready(out2)
    ref2 = _jsd_reference(p2_in, q2_in)
    assert jnp.allclose(out2, ref2, rtol=1e-5, atol=5e-6), (out2, ref2)

    # 3) Multi-tile accumulation + 2-way split with a clamped (masked) duplicate step.
    kp, kq = jax.random.split(jax.random.PRNGKey(2))
    p3 = jax.random.normal(kp, (9, 8, 128), dtype=jnp.float32)
    q3 = jax.random.normal(kq, (9, 8, 128), dtype=jnp.float32)
    out3 = jsd(p3, q3, num_splits=2, target_tile_bytes=4096)
    jax.block_until_ready(out3)
    ref3 = _jsd_reference(p3, q3)
    assert jnp.allclose(out3, ref3, rtol=1e-5, atol=5e-6), (out3, ref3)

    print("KERNEL_OK")
</pallas_src>

<mosaic_0001>
module attributes {stable_mosaic.version = 11 : i64} {
  func.func @_jsd_kernel(%arg0: i32, %arg1: i32, %arg2: memref<64x128xf32, #tpu.memory_space<vmem>>, %arg3: memref<64x128xf32, #tpu.memory_space<vmem>>, %arg4: memref<64x1xf32, #tpu.memory_space<vmem>>) attributes {dimension_semantics = [#tpu.dimension_semantics<parallel>, #tpu.dimension_semantics<arbitrary>], iteration_bounds = array<i64: 1, 1>, scalar_prefetch = 0 : i64, scratch_operands = 0 : i64, tpu.core_type = #tpu.core_type<tc>, window_params = [{transform_indices = @transform_0, window_bounds = array<i64: 64, 128>}, {transform_indices = @transform_1, window_bounds = array<i64: 64, 128>}, {transform_indices = @transform_2, window_bounds = array<i64: 64, 1>}]} {
    %c0_i32 = arith.constant 0 : i32
    %0 = arith.cmpi eq, %arg1, %c0_i32 : i32
    %1 = arith.extui %0 : i1 to i32
    %c0_i32_0 = arith.constant 0 : i32
    %2 = arith.cmpi ne, %1, %c0_i32_0 : i32
    scf.if %2 {
      %cst_16 = arith.constant 0.000000e+00 : f32
      %51 = vector.broadcast %cst_16 : f32 to vector<64x1xf32>
      %c0_17 = arith.constant 0 : index
      %c0_18 = arith.constant 0 : index
      %52 = vector.load %arg4[%c0_17, %c0_18] : memref<64x1xf32, #tpu.memory_space<vmem>>, vector<64x1xf32>
      tpu.vector_store %arg4[%c0_17, %c0_18], %51 {strides = array<i32>} : memref<64x1xf32, #tpu.memory_space<vmem>>, vector<64x1xf32>,
    } else {
    }
    %c0 = arith.constant 0 : index
    %c0_1 = arith.constant 0 : index
    %3 = vector.load %arg2[%c0, %c0_1] : memref<64x128xf32, #tpu.memory_space<vmem>>, vector<64x128xf32>
    %c0_2 = arith.constant 0 : index
    %c0_3 = arith.constant 0 : index
    %4 = vector.load %arg3[%c0_2, %c0_3] : memref<64x128xf32, #tpu.memory_space<vmem>>, vector<64x128xf32>
    %cst = arith.constant dense<0xFF800000> : vector<64xf32>
    %5 = vector.multi_reduction <maximumf>, %3, %cst [1] : vector<64x128xf32> to vector<64xf32>
    %6 = vector.shape_cast %5 : vector<64xf32> to vector<64x1xf32>
    %7 = vector.broadcast %6 : vector<64x1xf32> to vector<64x128xf32>
    %8 = arith.subf %3, %7 : vector<64x128xf32>
    %9 = math.exp %8 : vector<64x128xf32>
    %cst_4 = arith.constant dense<0.000000e+00> : vector<64xf32>
    %10 = vector.multi_reduction <add>, %9, %cst_4 [1] : vector<64x128xf32> to vector<64xf32>
    %11 = vector.shape_cast %10 : vector<64xf32> to vector<64x1xf32>
    %12 = math.log %11 : vector<64x1xf32>
    %13 = vector.broadcast %12 : vector<64x1xf32> to vector<64x128xf32>
    %14 = arith.subf %8, %13 : vector<64x128xf32>
    %cst_5 = arith.constant 1.000000e+00 : f32
    %15 = vector.broadcast %cst_5 : f32 to vector<64x1xf32>
    %16 = arith.divf %15, %11 : vector<64x1xf32>
    %17 = vector.broadcast %16 : vector<64x1xf32> to vector<64x128xf32>
    %18 = arith.mulf %9, %17 : vector<64x128xf32>
    %cst_6 = arith.constant dense<0xFF800000> : vector<64xf32>
    %19 = vector.multi_reduction <maximumf>, %4, %cst_6 [1] : vector<64x128xf32> to vector<64xf32>
    %20 = vector.shape_cast %19 : vector<64xf32> to vector<64x1xf32>
    %21 = vector.broadcast %20 : vector<64x1xf32> to vector<64x128xf32>
    %22 = arith.subf %4, %21 : vector<64x128xf32>
    %23 = math.exp %22 : vector<64x128xf32>
    %cst_7 = arith.constant dense<0.000000e+00> : vector<64xf32>
    %24 = vector.multi_reduction <add>, %23, %cst_7 [1] : vector<64x128xf32> to vector<64xf32>
    %25 = vector.shape_cast %24 : vector<64xf32> to vector<64x1xf32>
    %26 = math.log %25 : vector<64x1xf32>
    %27 = vector.broadcast %26 : vector<64x1xf32> to vector<64x128xf32>
    %28 = arith.subf %22, %27 : vector<64x128xf32>
    %cst_8 = arith.constant 1.000000e+00 : f32
    %29 = vector.broadcast %cst_8 : f32 to vector<64x1xf32>
    %30 = arith.divf %29, %25 : vector<64x1xf32>
    %31 = vector.broadcast %30 : vector<64x1xf32> to vector<64x128xf32>
    %32 = arith.mulf %23, %31 : vector<64x128xf32>
    %33 = arith.subf %18, %32 : vector<64x128xf32>
    %34 = arith.subf %14, %28 : vector<64x128xf32>
    %35 = arith.mulf %33, %34 : vector<64x128xf32>
    %cst_9 = arith.constant dense<0.000000e+00> : vector<64xf32>
    %36 = vector.multi_reduction <add>, %35, %cst_9 [1] : vector<64x128xf32> to vector<64xf32>
    %37 = vector.shape_cast %36 : vector<64xf32> to vector<64x1xf32>
    %c1_i32 = arith.constant 1 : i32
    %38 = arith.muli %arg0, %c1_i32 : i32
    %39 = arith.addi %38, %arg1 : i32
    %c64_i32 = arith.constant 64 : i32
    %40 = arith.muli %39, %c64_i32 : i32
    %41 = tpu.iota {dimensions = array<i32: 0>} : vector<64x1xi32>
    %42 = vector.broadcast %40 : i32 to vector<64x1xi32>
    %43 = arith.addi %42, %41 : vector<64x1xi32>
    %c0_10 = arith.constant 0 : index
    %c0_11 = arith.constant 0 : index
    %44 = vector.load %arg4[%c0_10, %c0_11] : memref<64x1xf32, #tpu.memory_space<vmem>>, vector<64x1xf32>
    %c64_i32_12 = arith.constant 64 : i32
    %45 = vector.broadcast %c64_i32_12 : i32 to vector<64x1xi32>
    %46 = arith.cmpi slt, %43, %45 : vector<64x1xi32>
    %cst_13 = arith.constant 0.000000e+00 : f32
    %47 = vector.broadcast %cst_13 : f32 to vector<64x1xf32>
    %48 = arith.select %46, %37, %47 : vector<64x1xi1>, vector<64x1xf32>
    %49 = arith.addf %44, %48 : vector<64x1xf32>
    %c0_14 = arith.constant 0 : index
    %c0_15 = arith.constant 0 : index
    %50 = vector.load %arg4[%c0_14, %c0_15] : memref<64x1xf32, #tpu.memory_space<vmem>>, vector<64x1xf32>
    tpu.vector_store %arg4[%c0_14, %c0_15], %49 {strides = array<i32>} : memref<64x1xf32, #tpu.memory_space<vmem>>, vector<64x1xf32>,
    return
  }
  func.func @transform_0(%arg0: i32, %arg1: i32) -> (i32, i32) {
    %c1_i32 = arith.constant 1 : i32
    %0 = arith.muli %arg0, %c1_i32 : i32
    %1 = arith.addi %0, %arg1 : i32
    %c0_i32 = arith.constant 0 : i32
    %2 = arith.minsi %1, %c0_i32 : i32
    %c0_i32_0 = arith.constant 0 : i32
    %c0_i32_1 = arith.constant 0 : i32
    return %2, %c0_i32_0 : i32, i32
  }
  func.func @transform_1(%arg0: i32, %arg1: i32) -> (i32, i32) {
    %c1_i32 = arith.constant 1 : i32
    %0 = arith.muli %arg0, %c1_i32 : i32
    %1 = arith.addi %0, %arg1 : i32
    %c0_i32 = arith.constant 0 : i32
    %2 = arith.minsi %1, %c0_i32 : i32
    %c0_i32_0 = arith.constant 0 : i32
    %c0_i32_1 = arith.constant 0 : i32
    return %2, %c0_i32_0 : i32, i32
  }
  func.func @transform_2(%arg0: i32, %arg1: i32) -> (i32, i32) {
    %c0_i32 = arith.constant 0 : i32
    %c0_i32_0 = arith.constant 0 : i32
    return %arg0, %c0_i32 : i32, i32
  }
}

</mosaic_0001>

<bundles_post_ra>
// kernel: tpu_custom_call.1
= control target key start
LH: loop header
LB: loop body
LE: loop exit
PB: predicated region body
PF: predicated region fallthrough
CT: control target
= control target key end

     0   :  { %7 = vsyncpa [#allocation3], 0  ;;  %s822_s0 = inlined_call_operand.hbm [shape: f32[64,128], index: 0, kind: input, shape index: {}]   ;;  %s823_s1 = inlined_call_operand.hbm [shape: f32[64,128], index: 1, kind: input, shape index: {}]   ;;  %s824_s2 = inlined_call_operand.vmem [shape: f32[64,1], index: 2, kind: output, shape index: {}]  }
   0x1   :  { %8 = vsyncpa [#allocation5], 0  ;;  %s552_s9 = smov [#allocation2]  }
   0x2   :  { %s20_s10 = sshll.u32 %s552_s9, 4  ;;  %s21_s10 = int_to_ptr.vmem [resolvable:$true] %s20_s10 }
   0x3   :  { %s516_s11 = scalar_lea.vmem %s21_s10, 1024  ;;  %p521_p1 = scmp.lt.s32.totalorder %s21_s10, %s21_s10 }
   0x4   :  { %p517_p0 = scmp.ne.s32.totalorder %s21_s10, %s516_s11  ;;  %p522_p2 = scmp.lt.s32.totalorder %s516_s11, %s516_s11 }
   0x6   :  { %p523_p3 = por %p522_p2, %p521_p1 }
   0x8   :  { %p524_p4 = pnand %p523_p3, %p517_p0 }
   0xa   :  { %527 = shalt.err (!%p524_p4)
}
   0xb   :  { %s553_s12 = smov 128   ;;  %s554_s13 = smov 8  }
   0xc   :  { %26 = dma.hbm_to_vmem [thread:$0]  %s822_s0, 1024, %s21_s10, [#allocation3], %s553_s12, %s553_s12, %s554_s13  }
   0xd   :  { %s555_s16 = smov [#allocation4]  }
   0xe   :  { %s38_s17 = sshll.u32 %s555_s16, 4  ;;  %s39_s17 = int_to_ptr.vmem [resolvable:$true] %s38_s17 }
   0xf   :  { %s536_s18 = scalar_lea.vmem %s39_s17, 1024  ;;  %p541_p6 = scmp.lt.s32.totalorder %s39_s17, %s39_s17 }
  0x10   :  { %p537_p5 = scmp.ne.s32.totalorder %s39_s17, %s536_s18  ;;  %p542_p7 = scmp.lt.s32.totalorder %s536_s18, %s536_s18 }
  0x12   :  { %p543_p8 = por %p542_p7, %p541_p6 }
  0x14   :  { %p544_p9 = pnand %p543_p8, %p537_p5 }
  0x16   :  { %547 = shalt.err (!%p544_p9)
}
  0x17   :  { %44 = dma.hbm_to_vmem [thread:$0]  %s823_s1, 1024, %s39_s17, [#allocation5], %s553_s12, %s553_s12, %s554_s13  }
  0x18   :  { %548 = dma.done.wait [#allocation3], 1024  }
  0x19   :  { %549 = vsyncadd [#allocation3], 4294966272 }
  0x1a   :  { %550 = dma.done.wait [#allocation5], 1024  }
  0x1b   :  { %551 = vsyncadd [#allocation5], 4294966272  ;;  %v72_v0 = vld [vmem:[#allocation2] sm:$0xff]  ;;  %v74_v1 = vld [vmem:[#allocation2 + $0x10] sm:$0xff]  ;;  %vm63_vm0 = vcmask 7168  }
  0x1c   :  { %88 = vmax.xlane.f32.xlu0 %v72_v0  ;;  %92 = vmax.xlane.f32.xlu1 %v74_v1  ;;  %v73_v2 = vld [vmem:[#allocation2 + $0x8] sm:$0xff]  ;;  %v75_v3 = vld [vmem:[#allocation2 + $0x18] sm:$0xff]  ;;  %v76_v4 = vld [vmem:[#allocation2 + $0x20] sm:$0xff] }
  0x1d   :  { %v77_v5 = vld [vmem:[#allocation2 + $0x28] sm:$0xff]  ;;  %v78_v6 = vld [vmem:[#allocation2 + $0x30] sm:$0xff]  ;;  %v79_v7 = vld [vmem:[#allocation2 + $0x38] sm:$0xff] }
  0x1e   :  { %v80_v8 = vld [vmem:[#allocation4] sm:$0xff]  ;;  %v81_v9 = vld [vmem:[#allocation4 + $0x8] sm:$0xff]  ;;  %v82_v10 = vld [vmem:[#allocation4 + $0x10] sm:$0xff] }
  0x1f   :  { %v83_v11 = vld [vmem:[#allocation4 + $0x18] sm:$0xff]  ;;  %v578_v12 = vld [vmem:[#allocation4 + $0x20] sm:$0xff]  ;;  %v580_v13 = vld [vmem:[#allocation4 + $0x28] sm:$0xff] }
  0x20   :  { %90 = vmax.xlane.f32.xlu0 %v73_v2  ;;  %94 = vmax.xlane.f32.xlu1 %v75_v3  ;;  %v584_v14 = vld [vmem:[#allocation4 + $0x30] sm:$0xff]  ;;  %v586_v15 = vld [vmem:[#allocation4 + $0x38] sm:$0xff] }
  0x24   :  { %96 = vmax.xlane.f32.xlu0 %v76_v4  ;;  %98 = vmax.xlane.f32.xlu1 %v77_v5 }
  0x28   :  { %100 = vmax.xlane.f32.xlu0 %v78_v6  ;;  %102 = vmax.xlane.f32.xlu1 %v79_v7 }
  0x2c   :  { %192 = vmax.xlane.f32.xlu0 %v80_v8  ;;  %194 = vmax.xlane.f32.xlu1 %v81_v9 }
  0x30   :  { %196 = vmax.xlane.f32.xlu0 %v82_v10  ;;  %198 = vmax.xlane.f32.xlu1 %v83_v11 }
  0x34   :  { %200 = vmax.xlane.f32.xlu0 %v578_v12  ;;  %202 = vmax.xlane.f32.xlu1 %v580_v13 }
  0x38   :  { %204 = vmax.xlane.f32.xlu0 %v584_v14  ;;  %206 = vmax.xlane.f32.xlu1 %v586_v15 }
  0xa5   :  { %v89_v16 = vpop.xlane.xlu0 %88  ;;  %v93_v17 = vpop.xlane.xlu1 %92 }
  0xa6   :  { %v590_v18 = vsub.f32 %v72_v0, %v89_v16  ;;  %v592_v19 = vsub.f32 %v74_v1, %v93_v17  ;;  %v556_v16 = vmov 0.0  }
  0xa7   :  { %64 = vst.msk [vmem:[%s824_s2] sm:$0xff] %vm63_vm0, %v556_v16  ;;  %65 = vst.msk [vmem:[%s824_s2 + $0x8] sm:$0xff] %vm63_vm0, %v556_v16 }
  0xa8   :  { %v112_v20 = vmul.f32 1.442695, %v590_v18  ;;  %v116_v21 = vmul.f32 1.442695, %v592_v19  ;;  %66 = vst.msk [vmem:[%s824_s2 + $0x10] sm:$0xff] %vm63_vm0, %v556_v16  ;;  %67 = vst.msk [vmem:[%s824_s2 + $0x18] sm:$0xff] %vm63_vm0, %v556_v16 }
  0xa9   :  { %v91_v22 = vpop.xlane.xlu0 %90  ;;  %v95_v23 = vpop.xlane.xlu1 %94  ;;  %68 = vst.msk [vmem:[%s824_s2 + $0x20] sm:$0xff] %vm63_vm0, %v556_v16  ;;  %69 = vst.msk [vmem:[%s824_s2 + $0x28] sm:$0xff] %vm63_vm0, %v556_v16 }
  0xaa   :  { %412 = vpow2.f32 %v112_v20  ;;  %v596_v24 = vsub.f32 %v73_v2, %v91_v22  ;;  %v598_v25 = vsub.f32 %v75_v3, %v95_v23  ;;  %70 = vst.msk [vmem:[%s824_s2 + $0x30] sm:$0xff] %vm63_vm0, %v556_v16  ;;  %71 = vst.msk [vmem:[%s824_s2 + $0x38] sm:$0xff] %vm63_vm0, %v556_v16 }
  0xab   :  { %414 = vpow2.f32 %v116_v21 }
  0xac   :  { %v114_v26 = vmul.f32 1.442695, %v596_v24  ;;  %v118_v27 = vmul.f32 1.442695, %v598_v25 }
  0xad   :  { %v97_v28 = vpop.xlane.xlu0 %96  ;;  %v99_v29 = vpop.xlane.xlu1 %98 }
  0xae   :  { %416 = vpow2.f32 %v114_v26  ;;  %v602_v30 = vsub.f32 %v76_v4, %v97_v28  ;;  %v604_v31 = vsub.f32 %v77_v5, %v99_v29 }
  0xaf   :  { %418 = vpow2.f32 %v118_v27 }
  0xb0   :  { %v120_v32 = vmul.f32 1.442695, %v602_v30  ;;  %v122_v33 = vmul.f32 1.442695, %v604_v31 }
  0xb1   :  { %v101_v34 = vpop.xlane.xlu0 %100  ;;  %v103_v35 = vpop.xlane.xlu1 %102 }
  0xb2   :  { %420 = vpow2.f32 %v120_v32  ;;  %v608_v36 = vsub.f32 %v78_v6, %v101_v34  ;;  %v610_v37 = vsub.f32 %v79_v7, %v103_v35 }
  0xb3   :  { %422 = vpow2.f32 %v122_v33 }
  0xb4   :  { %v124_v38 = vmul.f32 1.442695, %v608_v36  ;;  %v126_v39 = vmul.f32 1.442695, %v610_v37 }
  0xb5   :  { %v193_v40 = vpop.xlane.xlu0 %192  ;;  %v195_v41 = vpop.xlane.xlu1 %194 }
  0xb6   :  { %424 = vpow2.f32 %v124_v38  ;;  %v614_v42 = vsub.f32 %v80_v8, %v193_v40  ;;  %v616_v43 = vsub.f32 %v81_v9, %v195_v41 }
  0xb7   :  { %v618_v44 = vpop.eup %412  ;;  %426 = vpow2.f32 %v126_v39 }
  0xb8   :  { %v216_v45 = vmul.f32 1.442695, %v614_v42  ;;  %128 = vadd.xlane.f32.xlu0 %v618_v44  ;;  %v218_v46 = vmul.f32 1.442695, %v616_v43  ;;  %v623_v47 = vpop.eup %414 }
  0xb9   :  { %v197_v48 = vpop.xlane.xlu0 %196  ;;  %v199_v49 = vpop.xlane.xlu1 %198 }
  0xba   :  { %428 = vpow2.f32 %v216_v45  ;;  %v625_v50 = vsub.f32 %v82_v10, %v197_v48  ;;  %v627_v51 = vsub.f32 %v83_v11, %v199_v49 }
  0xbb   :  { %v629_v52 = vpop.eup %416  ;;  %430 = vpow2.f32 %v218_v46 }
  0xbc   :  { %v220_v53 = vmul.f32 1.442695, %v625_v50  ;;  %132 = vadd.xlane.f32.xlu0 %v623_v47  ;;  %130 = vadd.xlane.f32.xlu1 %v629_v52  ;;  %v222_v54 = vmul.f32 1.442695, %v627_v51  ;;  %v635_v55 = vpop.eup %418 }
  0xbd   :  { %v201_v56 = vpop.xlane.xlu0 %200  ;;  %v203_v57 = vpop.xlane.xlu1 %202 }
  0xbe   :  { %432 = vpow2.f32 %v220_v53  ;;  %v638_v58 = vsub.f32 %v578_v12, %v201_v56  ;;  %v641_v59 = vsub.f32 %v580_v13, %v203_v57 }
  0xbf   :  { %v643_v60 = vpop.eup %420  ;;  %434 = vpow2.f32 %v222_v54 }
  0xc0   :  { %v224_v61 = vmul.f32 1.442695, %v638_v58  ;;  %134 = vadd.xlane.f32.xlu1 %v635_v55  ;;  %136 = vadd.xlane.f32.xlu0 %v643_v60  ;;  %v226_v62 = vmul.f32 1.442695, %v641_v59  ;;  %v649_v63 = vpop.eup %422 }
  0xc1   :  { %v205_v0 = vpop.xlane.xlu0 %204  ;;  %v207_v1 = vpop.xlane.xlu1 %206 }
  0xc2   :  { %436 = vpow2.f32 %v224_v61  ;;  %v652_v2 = vsub.f32 %v584_v14, %v205_v0  ;;  %v655_v3 = vsub.f32 %v586_v15, %v207_v1 }
  0xc3   :  { %v657_v4 = vpop.eup %424  ;;  %438 = vpow2.f32 %v226_v62 }
  0xc4   :  { %v228_v5 = vmul.f32 1.442695, %v652_v2  ;;  %138 = vadd.xlane.f32.xlu1 %v649_v63  ;;  %140 = vadd.xlane.f32.xlu0 %v657_v4  ;;  %v230_v6 = vmul.f32 1.442695, %v655_v3  ;;  %v663_v7 = vpop.eup %426 }
  0xc6   :  { %440 = vpow2.f32 %v228_v5 }
  0xc7   :  { %v665_v8 = vpop.eup %428  ;;  %442 = vpow2.f32 %v230_v6 }
  0xc8   :  { %142 = vadd.xlane.f32.xlu1 %v663_v7  ;;  %232 = vadd.xlane.f32.xlu0 %v665_v8  ;;  %v669_v9 = vpop.eup %430 }
  0xcb   :  { %v671_v10 = vpop.eup %432 }
  0xcc   :  { %234 = vadd.xlane.f32.xlu1 %v669_v9  ;;  %236 = vadd.xlane.f32.xlu0 %v671_v10  ;;  %v675_v11 = vpop.eup %434 }
  0xcf   :  { %v677_v12 = vpop.eup %436 }
  0xd0   :  { %238 = vadd.xlane.f32.xlu1 %v675_v11  ;;  %240 = vadd.xlane.f32.xlu0 %v677_v12  ;;  %v681_v13 = vpop.eup %438 }
  0xd3   :  { %v683_v14 = vpop.eup %440 }
  0xd4   :  { %242 = vadd.xlane.f32.xlu1 %v681_v13  ;;  %244 = vadd.xlane.f32.xlu0 %v683_v14  ;;  %v687_v15 = vpop.eup %442 }
  0xd8   :  { %246 = vadd.xlane.f32.xlu1 %v687_v15 }
 0x141   :  { %v129_v17 = vpop.xlane.xlu0 %128 }
 0x142   :  { %444 = vlog2.f32 %v129_v17 }
 0x143   :  { %446 = vrcp.f32 %v129_v17 }
 0x145   :  { %v131_v20 = vpop.xlane.xlu1 %130  ;;  %v133_v21 = vpop.xlane.xlu0 %132 }
 0x146   :  { %448 = vlog2.f32 %v131_v20 }
 0x147   :  { %450 = vrcp.f32 %v131_v20 }
 0x148   :  { %452 = vlog2.f32 %v133_v21 }
 0x149   :  { %454 = vrcp.f32 %v133_v21  ;;  %v135_v22 = vpop.xlane.xlu1 %134  ;;  %v137_v23 = vpop.xlane.xlu0 %136 }
 0x14a   :  { %456 = vlog2.f32 %v135_v22 }
 0x14b   :  { %458 = vrcp.f32 %v135_v22 }
 0x14c   :  { %460 = vlog2.f32 %v137_v23 }
 0x14d   :  { %462 = vrcp.f32 %v137_v23  ;;  %v139_v26 = vpop.xlane.xlu1 %138  ;;  %v141_v27 = vpop.xlane.xlu0 %140 }
 0x14e   :  { %464 = vlog2.f32 %v139_v26 }
 0x14f   :  { %466 = vrcp.f32 %v139_v26  ;;  %v445_v28 = vpop.eup %444 }
 0x150   :  { %468 = vlog2.f32 %v141_v27  ;;  %v447_v33 = vpop.eup %446  ;;  %v145_v5 = vmul.f32 0.6931472, %v445_v28 }
 0x151   :  { %470 = vrcp.f32 %v141_v27  ;;  %v143_v29 = vpop.xlane.xlu1 %142  ;;  %v233_v32 = vpop.xlane.xlu0 %232 }
 0x152   :  { %472 = vlog2.f32 %v143_v29  ;;  %v160_v27 = vsub.f32 %v590_v18, %v145_v5 }
 0x153   :  { %v449_v34 = vpop.eup %448  ;;  %474 = vrcp.f32 %v143_v29  ;;  %v184_v29 = vmul.f32 %v447_v33, %v618_v44 }
 0x154   :  { %v451_v35 = vpop.eup %450  ;;  %476 = vlog2.f32 %v233_v32  ;;  %v147_v17 = vmul.f32 0.6931472, %v449_v34 }
 0x155   :  { %v453_v38 = vpop.eup %452  ;;  %478 = vrcp.f32 %v233_v32  ;;  %v235_v39 = vpop.xlane.xlu1 %234 }
 0x156   :  { %v237_v40 = vpop.xlane.xlu0 %236  ;;  %v455_v41 = vpop.eup %454  ;;  %480 = vlog2.f32 %v235_v39  ;;  %v149_v21 = vmul.f32 0.6931472, %v453_v38 }
 0x157   :  { %v457_v45 = vpop.eup %456  ;;  %482 = vrcp.f32 %v235_v39 }
 0x158   :  { %v459_v46 = vpop.eup %458  ;;  %484 = vlog2.f32 %v237_v40  ;;  %v151_v32 = vmul.f32 0.6931472, %v457_v45  ;;  %v162_v44 = vsub.f32 %v592_v19, %v149_v21 }
 0x159   :  { %v461_v48 = vpop.eup %460  ;;  %486 = vrcp.f32 %v237_v40  ;;  %v239_v49 = vpop.xlane.xlu1 %238  ;;  %v185_v40 = vmul.f32 %v451_v35, %v629_v52  ;;  %v187_v33 = vmul.f32 %v459_v46, %v635_v55 }
 0x15a   :  { %v241_v53 = vpop.xlane.xlu0 %240  ;;  %v463_v54 = vpop.eup %462  ;;  %488 = vlog2.f32 %v239_v49 }
 0x15b   :  { %v465_v56 = vpop.eup %464  ;;  %490 = vrcp.f32 %v239_v49 }
 0x15c   :  { %v722_v57 = vpop.eup %466  ;;  %492 = vlog2.f32 %v241_v53  ;;  %v155_v21 = vmul.f32 0.6931472, %v465_v56 }
 0x15d   :  { %v469_v61 = vpop.eup %468  ;;  %494 = vrcp.f32 %v241_v53  ;;  %v243_v62 = vpop.xlane.xlu1 %242  ;;  %v161_v53 = vsub.f32 %v596_v24, %v147_v17 }
 0x15e   :  { %v245_v0 = vpop.xlane.xlu0 %244  ;;  %v724_v1 = vpop.eup %470  ;;  %496 = vlog2.f32 %v243_v62 }
 0x15f   :  { %v726_v6 = vpop.eup %472  ;;  %498 = vrcp.f32 %v243_v62  ;;  %v186_v62 = vmul.f32 %v455_v41, %v623_v47  ;;  %v163_v47 = vsub.f32 %v598_v25, %v151_v32  ;;  %v188_v41 = vmul.f32 %v463_v54, %v643_v60 }
 0x160   :  { %v728_v16 = vpop.eup %474  ;;  %500 = vlog2.f32 %v245_v0 }
 0x161   :  { %v477_v20 = vpop.eup %476  ;;  %502 = vrcp.f32 %v245_v0  ;;  %v247_v22 = vpop.xlane.xlu1 %246 }
 0x162   :  { %v479_v23 = vpop.eup %478  ;;  %v249_v26 = vmul.f32 0.6931472, %v477_v20  ;;  %504 = vlog2.f32 %v247_v22  ;;  %v153_v20 = vmul.f32 0.6931472, %v461_v48 }
 0x163   :  { %v481_v28 = vpop.eup %480  ;;  %506 = vrcp.f32 %v247_v22  ;;  %v288_v39 = vmul.f32 %v479_v23, %v665_v8 }
 0x164   :  { %v483_v34 = vpop.eup %482  ;;  %v251_v49 = vmul.f32 0.6931472, %v481_v28  ;;  %v264_v38 = vsub.f32 %v614_v42, %v249_v26  ;;  %v157_v28 = vmul.f32 0.6931472, %v469_v61 }
 0x165   :  { %v485_v0 = vpop.eup %484  ;;  %v289_v18 = vmul.f32 %v483_v34, %v669_v9  ;;  %v296_v5 = vsub.f32 %v184_v29, %v288_v39 }
 0x166   :  { %v487_v45 = vpop.eup %486  ;;  %v253_v8 = vmul.f32 0.6931472, %v485_v0  ;;  %v304_v52 = vsub.f32 %v160_v27, %v264_v38  ;;  %v265_v35 = vsub.f32 %v616_v43, %v251_v49  ;;  %v164_v43 = vsub.f32 %v602_v30, %v153_v20 }
 0x167   :  { %v489_v22 = vpop.eup %488  ;;  %v297_v42 = vsub.f32 %v185_v40, %v289_v18  ;;  %v290_v24 = vmul.f32 %v487_v45, %v671_v10  ;;  %v159_v38 = vmul.f32 0.6931472, %v726_v6 }
 0x168   :  { %v491_v48 = vpop.eup %490  ;;  %v255_v9 = vmul.f32 0.6931472, %v489_v22  ;;  %v312_v17 = vmul.f32 %v304_v52, %v296_v5  ;;  %v305_v19 = vsub.f32 %v161_v53, %v265_v35  ;;  %v266_v55 = vsub.f32 %v625_v50, %v253_v8 }
 0x169   :  { %v493_v46 = vpop.eup %492  ;;  %v298_v23 = vsub.f32 %v186_v62, %v290_v24  ;;  %v291_v26 = vmul.f32 %v491_v48, %v675_v11  ;;  %v189_v50 = vmul.f32 %v722_v57, %v649_v63  ;;  %v167_v5 = vsub.f32 %v610_v37, %v159_v38  ;;  %v356_v37 = vld [vmem:[%s824_s2] sm:$0xff]  ;;  %v359_v48 = vld [vmem:[%s824_s2 + $0x18] sm:$0xff] }
 0x16a   :  { %v495_v27 = vpop.eup %494  ;;  %v257_v29 = vmul.f32 0.6931472, %v493_v46  ;;  %320 = vadd.xlane.f32.xlu0 %v312_v17  ;;  %v313_v10 = vmul.f32 %v305_v19, %v297_v42  ;;  %v306_v25 = vsub.f32 %v162_v44, %v266_v55  ;;  %v267_v60 = vsub.f32 %v627_v51, %v255_v9  ;;  %v360_v19 = vld [vmem:[%s824_s2 + $0x20] sm:$0xff] }
 0x16b   :  { %v497_v54 = vpop.eup %496  ;;  %v299_v32 = vsub.f32 %v187_v33, %v291_v26  ;;  %v292_v39 = vmul.f32 %v495_v27, %v677_v12  ;;  %v165_v51 = vsub.f32 %v604_v31, %v155_v21  ;;  %v166_v44 = vsub.f32 %v608_v36, %v157_v28  ;;  %v361_v21 = vld [vmem:[%s824_s2 + $0x28] sm:$0xff] }
 0x16c   :  { %v499_v56 = vpop.eup %498  ;;  %v259_v40 = vmul.f32 0.6931472, %v497_v54  ;;  %322 = vadd.xlane.f32.xlu1 %v313_v10  ;;  %v314_v11 = vmul.f32 %v306_v25, %v298_v23  ;;  %v307_v30 = vsub.f32 %v163_v47, %v267_v60  ;;  %v268_v34 = vsub.f32 %v638_v58, %v257_v29  ;;  %v363_v10 = vld [vmem:[%s824_s2 + $0x38] sm:$0xff] }
 0x16d   :  { %v501_v49 = vpop.eup %500  ;;  %v300_v53 = vsub.f32 %v188_v41, %v292_v39  ;;  %v293_v61 = vmul.f32 %v499_v56, %v681_v13  ;;  %v190_v58 = vmul.f32 %v724_v1, %v657_v4 }
 0x16e   :  { %v503_v62 = vpop.eup %502  ;;  %v261_v12 = vmul.f32 0.6931472, %v501_v49  ;;  %324 = vadd.xlane.f32.xlu0 %v314_v11  ;;  %v315_v0 = vmul.f32 %v307_v30, %v299_v32  ;;  %v308_v63 = vsub.f32 %v164_v43, %v268_v34  ;;  %v269_v57 = vsub.f32 %v641_v59, %v259_v40  ;;  %v362_v43 = vld [vmem:[%s824_s2 + $0x30] sm:$0xff] }
 0x16f   :  { %v505_v20 = vpop.eup %504  ;;  %v301_v18 = vsub.f32 %v189_v50, %v293_v61  ;;  %v294_v6 = vmul.f32 %v503_v62, %v683_v14  ;;  %v191_v59 = vmul.f32 %v728_v16, %v663_v7  ;;  %v357_v7 = vld [vmem:[%s824_s2 + $0x8] sm:$0xff] }
 0x170   :  { %v507_v33 = vpop.eup %506  ;;  %v263_v31 = vmul.f32 0.6931472, %v505_v20  ;;  %326 = vadd.xlane.f32.xlu1 %v315_v0  ;;  %v316_v13 = vmul.f32 %v308_v63, %v300_v53  ;;  %v309_v45 = vsub.f32 %v165_v51, %v269_v57  ;;  %v270_v8 = vsub.f32 %v652_v2, %v261_v12 }
 0x171   :  { %v295_v52 = vmul.f32 %v507_v33, %v687_v15  ;;  %v302_v35 = vsub.f32 %v190_v58, %v294_v6 }
 0x172   :  { %328 = vadd.xlane.f32.xlu0 %v316_v13  ;;  %v317_v36 = vmul.f32 %v309_v45, %v301_v18  ;;  %v310_v4 = vsub.f32 %v166_v44, %v270_v8  ;;  %v271_v14 = vsub.f32 %v655_v3, %v263_v31  ;;  %v358_v3 = vld [vmem:[%s824_s2 + $0x10] sm:$0xff] }
 0x173   :  { %v303_v22 = vsub.f32 %v191_v59, %v295_v52 }
 0x174   :  { %330 = vadd.xlane.f32.xlu1 %v317_v36  ;;  %v318_v1 = vmul.f32 %v310_v4, %v302_v35  ;;  %v311_v42 = vsub.f32 %v167_v5, %v271_v14 }
 0x176   :  { %332 = vadd.xlane.f32.xlu0 %v318_v1  ;;  %v319_v24 = vmul.f32 %v311_v42, %v303_v22 }
 0x178   :  { %334 = vadd.xlane.f32.xlu1 %v319_v24 }
 0x1f3   :  { %v321_v2 = vpop.xlane.xlu0 %320 }
 0x1f4   :  { %v380_v15 = vadd.f32 %v356_v37, %v321_v2 }
 0x1f5   :  { %v323_v16 = vpop.xlane.xlu1 %322 }
 0x1f6   :  { %389 = vst.msk [vmem:[%s824_s2] sm:$0xff] %vm63_vm0, %v380_v15  ;;  %v381_v47 = vadd.f32 %v357_v7, %v323_v16 }
 0x1f7   :  { %v325_v41 = vpop.xlane.xlu0 %324 }
 0x1f8   :  { %390 = vst.msk [vmem:[%s824_s2 + $0x8] sm:$0xff] %vm63_vm0, %v381_v47  ;;  %v382_v9 = vadd.f32 %v358_v3, %v325_v41 }
 0x1f9   :  { %v327_v17 = vpop.xlane.xlu1 %326 }
 0x1fa   :  { %391 = vst.msk [vmem:[%s824_s2 + $0x10] sm:$0xff] %vm63_vm0, %v382_v9  ;;  %v383_v55 = vadd.f32 %v359_v48, %v327_v17 }
 0x1fb   :  { %v329_v46 = vpop.xlane.xlu0 %328 }
 0x1fc   :  { %392 = vst.msk [vmem:[%s824_s2 + $0x18] sm:$0xff] %vm63_vm0, %v383_v55  ;;  %v384_v23 = vadd.f32 %v360_v19, %v329_v46 }
 0x1fd   :  { %v331_v26 = vpop.xlane.xlu1 %330 }
 0x1fe   :  { %393 = vst.msk [vmem:[%s824_s2 + $0x20] sm:$0xff] %vm63_vm0, %v384_v23  ;;  %v385_v27 = vadd.f32 %v361_v21, %v331_v26 }
 0x1ff   :  { %v333_v29 = vpop.xlane.xlu0 %332 }
 0x200   :  { %394 = vst.msk [vmem:[%s824_s2 + $0x28] sm:$0xff] %vm63_vm0, %v385_v27  ;;  %v386_v25 = vadd.f32 %v362_v43, %v333_v29 }
 0x201   :  { %v335_v60 = vpop.xlane.xlu1 %334 }
 0x202   :  { %395 = vst.msk [vmem:[%s824_s2 + $0x30] sm:$0xff] %vm63_vm0, %v386_v25  ;;  %v387_v54 = vadd.f32 %v363_v10, %v335_v60 }
 0x204   :  { %396 = vst.msk [vmem:[%s824_s2 + $0x38] sm:$0xff] %vm63_vm0, %v387_v54 }
 0x205   :  { %401 = vsyncpa [#allocation3], 1 }
 0x206   :  { %402 = vsyncpa [#allocation5], 1 }

</bundles_post_ra>
